<compile_context>
chip_gen: v5e
topology: v5e:2x2
jax: 0.10.0
libtpu: 0.0.40
codegen_flags: <defaults>
</compile_context>

<pallas_src>
import functools

import jax
import jax.numpy as jnp
from jax.experimental import pallas as pl
from jax.experimental.pallas import tpu as pltpu


def _round_up(x: int, m: int) -> int:
    return (x + m - 1) // m * m


def patch_embed_ln_kernel(x_ref, w_ref, b_ref, g_ref, beta_ref, o_ref, *, n_real):
    # x_ref: [TM, K] bf16   (flattened patches tile)
    # w_ref: [K, Np] bf16   (projection weight, VMEM-resident across the grid)
    # b_ref, g_ref, beta_ref: [1, Np] f32 (zero-padded beyond n_real)
    # o_ref: [TM, Np] bf16
    y = jnp.dot(x_ref[...], w_ref[...], preferred_element_type=jnp.float32)
    y = y + b_ref[...]

    # Single-pass LayerNorm statistics.  Columns >= n_real are exactly zero
    # (weight/bias zero-padded), so they contribute nothing to either sum;
    # divide by the real hidden size for correct mean/var.
    inv_n = jnp.float32(1.0 / n_real)
    s1 = jnp.sum(y, axis=-1, keepdims=True)
    s2 = jnp.sum(y * y, axis=-1, keepdims=True)
    mean = s1 * inv_n
    var = s2 * inv_n - mean * mean

    y_hat = (y - mean) * jax.lax.rsqrt(var + 1e-5)
    # gamma/beta are zero in the padded columns -> padded output columns are 0.
    o_ref[...] = (y_hat * g_ref[...] + beta_ref[...]).astype(o_ref.dtype)


def patch_embed_forward(x_nchw, w_conv, b, gamma, beta, patch_size, *, tm_max=512):
    """x_nchw: [B, C, H, W]. w_conv: [hidden, C, p, p] (PyTorch Conv2d layout)."""
    B, C, H, W = x_nchw.shape
    p = patch_size
    hidden = w_conv.shape[0]
    Hp, Wp = H // p, W // p

    # --- glue: patchify NCHW -> [M, K], K = C*p*p (matches Conv2d stride=p) ---
    x_patches = x_nchw.reshape(B, C, Hp, p, Wp, p)
    x_patches = jnp.transpose(x_patches, (0, 2, 4, 1, 3, 5))       # [B,Hp,Wp,C,p,p]
    x_patches = x_patches.reshape(B * Hp * Wp, C * p * p)          # [M, K]
    x_patches = x_patches.astype(jnp.bfloat16)                     # bf16 matmul input

    M, K = x_patches.shape
    N = hidden
    Np = _round_up(N, 128)                                         # lane-dense output

    # Conv2d weight [hidden, C, p, p] -> matmul weight [K, Np] (zero-padded cols).
    w_mat = w_conv.reshape(hidden, K).T.astype(jnp.bfloat16)       # [K, N]
    if Np != N:
        w_mat = jnp.pad(w_mat, ((0, 0), (0, Np - N)))
        b_p = jnp.pad(b, (0, Np - N))
        g_p = jnp.pad(gamma, (0, Np - N))
        be_p = jnp.pad(beta, (0, Np - N))
    else:
        b_p, g_p, be_p = b, gamma, beta
    b_p = b_p.reshape(1, Np).astype(jnp.float32)
    g_p = g_p.reshape(1, Np).astype(jnp.float32)
    be_p = be_p.reshape(1, Np).astype(jnp.float32)

    # Tile only M.  Weight/LN vectors stay resident; output per-tile is
    # 2*TM*(K+Np) bf16 bytes double-buffered -> well under every chip's VMEM.
    TM = M if M <= tm_max else tm_max
    grid = (pl.cdiv(M, TM),)

    cost = pl.CostEstimate(
        flops=2 * M * K * Np,
        transcendentals=M,                      # one rsqrt per row
        bytes_accessed=(M * K * 2 + K * Np * 2 + 3 * Np * 4 + M * Np * 2),
    )

    out = pl.pallas_call(
        functools.partial(patch_embed_ln_kernel, n_real=N),
        out_shape=jax.ShapeDtypeStruct((M, Np), jnp.bfloat16),
        grid_spec=pltpu.PrefetchScalarGridSpec(
            num_scalar_prefetch=0,
            grid=grid,
            in_specs=[
                pl.BlockSpec((TM, K), lambda i: (i, 0)),    # streamed patch rows
                pl.BlockSpec((K, Np), lambda i: (0, 0)),    # weight, VMEM-resident
                pl.BlockSpec((1, Np), lambda i: (0, 0)),    # bias
                pl.BlockSpec((1, Np), lambda i: (0, 0)),    # LN gamma
                pl.BlockSpec((1, Np), lambda i: (0, 0)),    # LN beta
            ],
            out_specs=pl.BlockSpec((TM, Np), lambda i: (i, 0)),
        ),
        compiler_params=pltpu.CompilerParams(
            dimension_semantics=("parallel",),              # megacore-shardable
            vmem_limit_bytes=32 * 1024 * 1024,
        ),
        cost_estimate=cost,
    )(x_patches, w_mat, b_p, g_p, be_p)

    # strip lane padding, back to sequence form [B, num_patches, hidden]
    return out[:, :N].reshape(B, Hp * Wp, N)


patch_embed_forward_jit = jax.jit(patch_embed_forward, static_argnums=(5,))


if __name__ == "__main__":
    # Small, deterministic shapes consistent with a patch-4 vision encoder.
    B, C, H, W = 2, 4, 16, 16
    patch = 4
    hidden = 32

    key = jax.random.PRNGKey(0)
    kx, kw, kb, kg, kbe = jax.random.split(key, 5)

    x = jax.random.normal(kx, (B, C, H, W), dtype=jnp.float32)
    w_conv = jax.random.normal(kw, (hidden, C, patch, patch), dtype=jnp.float32) * 0.02
    b = jax.random.normal(kb, (hidden,), dtype=jnp.float32) * 0.02
    gamma = jnp.ones((hidden,), dtype=jnp.float32)
    beta = jnp.zeros((hidden,), dtype=jnp.float32)

    out = patch_embed_forward_jit(x, w_conv, b, gamma, beta, patch)
    out = jax.block_until_ready(out)

    # Sanity check against a plain-JAX f32 reference (bf16 I/O -> loose tol).
    Hp, Wp = H // patch, W // patch
    xp = jnp.transpose(x.reshape(B, C, Hp, patch, Wp, patch),
                       (0, 2, 4, 1, 3, 5)).reshape(B * Hp * Wp, C * patch * patch)
    y_ref = xp @ w_conv.reshape(hidden, -1).T + b
    mu = y_ref.mean(-1, keepdims=True)
    var = ((y_ref - mu) ** 2).mean(-1, keepdims=True)
    y_ref = ((y_ref - mu) * jax.lax.rsqrt(var + 1e-5)) * gamma + beta
    y_ref = y_ref.reshape(B, Hp * Wp, hidden)

    assert out.shape == (B, Hp * Wp, hidden)
    assert jnp.allclose(out.astype(jnp.float32), y_ref, atol=5e-2, rtol=5e-2)

    print("KERNEL_OK")
</pallas_src>

<mosaic_0001>
module attributes {stable_mosaic.version = 11 : i64} {
  func.func @patch_embed_ln_kernel(%arg0: i32, %arg1: memref<32x64xbf16, #tpu.memory_space<vmem>>, %arg2: memref<64x128xbf16, #tpu.memory_space<vmem>>, %arg3: memref<1x128xf32, #tpu.memory_space<vmem>>, %arg4: memref<1x128xf32, #tpu.memory_space<vmem>>, %arg5: memref<1x128xf32, #tpu.memory_space<vmem>>, %arg6: memref<32x128xbf16, #tpu.memory_space<vmem>>) attributes {dimension_semantics = [#tpu.dimension_semantics<parallel>], iteration_bounds = array<i64: 1>, scalar_prefetch = 0 : i64, scratch_operands = 0 : i64, tpu.core_type = #tpu.core_type<tc>, window_params = [{transform_indices = @transform_0, window_bounds = array<i64: 32, 64>}, {pipeline_mode = #tpu.pipeline_mode<synchronous>, transform_indices = @transform_1, window_bounds = array<i64: 64, 128>}, {pipeline_mode = #tpu.pipeline_mode<synchronous>, transform_indices = @transform_2, window_bounds = array<i64: 1, 128>}, {pipeline_mode = #tpu.pipeline_mode<synchronous>, transform_indices = @transform_3, window_bounds = array<i64: 1, 128>}, {pipeline_mode = #tpu.pipeline_mode<synchronous>, transform_indices = @transform_4, window_bounds = array<i64: 1, 128>}, {transform_indices = @transform_5, window_bounds = array<i64: 32, 128>}]} {
    %c0 = arith.constant 0 : index
    %c0_0 = arith.constant 0 : index
    %0 = vector.load %arg1[%c0, %c0_0] : memref<32x64xbf16, #tpu.memory_space<vmem>>, vector<32x64xbf16>
    %c0_1 = arith.constant 0 : index
    %c0_2 = arith.constant 0 : index
    %1 = vector.load %arg2[%c0_1, %c0_2] : memref<64x128xbf16, #tpu.memory_space<vmem>>, vector<64x128xbf16>
    %cst = arith.constant dense<0.000000e+00> : vector<32x128xf32>
    %2 = tpu.matmul %0, %1, %cst {dimension_numbers = #tpu.dot_dimension_numbers<[1], [0], [0], [1], [0, 0, 1, 1], [], []>} : vector<32x64xbf16>, vector<64x128xbf16>, vector<32x128xf32> -> vector<32x128xf32>
    %c0_3 = arith.constant 0 : index
    %c0_4 = arith.constant 0 : index
    %3 = vector.load %arg3[%c0_3, %c0_4] : memref<1x128xf32, #tpu.memory_space<vmem>>, vector<1x128xf32>
    %4 = vector.broadcast %3 : vector<1x128xf32> to vector<32x128xf32>
    %5 = arith.addf %2, %4 : vector<32x128xf32>
    %cst_5 = arith.constant dense<0.000000e+00> : vector<32xf32>
    %6 = vector.multi_reduction <add>, %5, %cst_5 [1] : vector<32x128xf32> to vector<32xf32>
    %7 = vector.shape_cast %6 : vector<32xf32> to vector<32x1xf32>
    %8 = arith.mulf %5, %5 : vector<32x128xf32>
    %cst_6 = arith.constant dense<0.000000e+00> : vector<32xf32>
    %9 = vector.multi_reduction <add>, %8, %cst_6 [1] : vector<32x128xf32> to vector<32xf32>
    %10 = vector.shape_cast %9 : vector<32xf32> to vector<32x1xf32>
    %cst_7 = arith.constant 3.125000e-02 : f32
    %11 = vector.broadcast %cst_7 : f32 to vector<32x1xf32>
    %12 = arith.mulf %7, %11 : vector<32x1xf32>
    %cst_8 = arith.constant 3.125000e-02 : f32
    %13 = vector.broadcast %cst_8 : f32 to vector<32x1xf32>
    %14 = arith.mulf %10, %13 : vector<32x1xf32>
    %15 = arith.mulf %12, %12 : vector<32x1xf32>
    %16 = arith.subf %14, %15 : vector<32x1xf32>
    %17 = vector.broadcast %12 : vector<32x1xf32> to vector<32x128xf32>
    %18 = arith.subf %5, %17 : vector<32x128xf32>
    %cst_9 = arith.constant 9.99999974E-6 : f32
    %19 = vector.broadcast %cst_9 : f32 to vector<32x1xf32>
    %20 = arith.addf %16, %19 : vector<32x1xf32>
    %21 = math.rsqrt %20 : vector<32x1xf32>
    %22 = vector.broadcast %21 : vector<32x1xf32> to vector<32x128xf32>
    %23 = arith.mulf %18, %22 : vector<32x128xf32>
    %c0_10 = arith.constant 0 : index
    %c0_11 = arith.constant 0 : index
    %24 = vector.load %arg4[%c0_10, %c0_11] : memref<1x128xf32, #tpu.memory_space<vmem>>, vector<1x128xf32>
    %25 = vector.broadcast %24 : vector<1x128xf32> to vector<32x128xf32>
    %26 = arith.mulf %23, %25 : vector<32x128xf32>
    %c0_12 = arith.constant 0 : index
    %c0_13 = arith.constant 0 : index
    %27 = vector.load %arg5[%c0_12, %c0_13] : memref<1x128xf32, #tpu.memory_space<vmem>>, vector<1x128xf32>
    %28 = vector.broadcast %27 : vector<1x128xf32> to vector<32x128xf32>
    %29 = arith.addf %26, %28 : vector<32x128xf32>
    %30 = arith.truncf %29 : vector<32x128xf32> to vector<32x128xbf16>
    %c0_14 = arith.constant 0 : index
    %c0_15 = arith.constant 0 : index
    %31 = vector.load %arg6[%c0_14, %c0_15] : memref<32x128xbf16, #tpu.memory_space<vmem>>, vector<32x128xbf16>
    tpu.vector_store %arg6[%c0_14, %c0_15], %30 {strides = array<i32>} : memref<32x128xbf16, #tpu.memory_space<vmem>>, vector<32x128xbf16>,
    return
  }
  func.func @transform_0(%arg0: i32) -> (i32, i32) {
    %c0_i32 = arith.constant 0 : i32
    %c0_i32_0 = arith.constant 0 : i32
    return %arg0, %c0_i32 : i32, i32
  }
  func.func @transform_1(%arg0: i32) -> (i32, i32) {
    %c0_i32 = arith.constant 0 : i32
    %c0_i32_0 = arith.constant 0 : i32
    %c0_i32_1 = arith.constant 0 : i32
    return %c0_i32, %c0_i32_0 : i32, i32
  }
  func.func @transform_2(%arg0: i32) -> (i32, i32) {
    %c0_i32 = arith.constant 0 : i32
    %c0_i32_0 = arith.constant 0 : i32
    %c0_i32_1 = arith.constant 0 : i32
    return %c0_i32, %c0_i32_0 : i32, i32
  }
  func.func @transform_3(%arg0: i32) -> (i32, i32) {
    %c0_i32 = arith.constant 0 : i32
    %c0_i32_0 = arith.constant 0 : i32
    %c0_i32_1 = arith.constant 0 : i32
    return %c0_i32, %c0_i32_0 : i32, i32
  }
  func.func @transform_4(%arg0: i32) -> (i32, i32) {
    %c0_i32 = arith.constant 0 : i32
    %c0_i32_0 = arith.constant 0 : i32
    %c0_i32_1 = arith.constant 0 : i32
    return %c0_i32, %c0_i32_0 : i32, i32
  }
  func.func @transform_5(%arg0: i32) -> (i32, i32) {
    %c0_i32 = arith.constant 0 : i32
    %c0_i32_0 = arith.constant 0 : i32
    return %arg0, %c0_i32 : i32, i32
  }
}

</mosaic_0001>

<bundles_post_ra>
// kernel: patch_embed_forward.1
= control target key start
LH: loop header
LB: loop body
LE: loop exit
PB: predicated region body
PF: predicated region fallthrough
CT: control target
= control target key end

     0   :  { %s412_s0 = inlined_call_operand.vmem [shape: bf16[32,64], index: 0, kind: input, shape index: {}]   ;;  %s413_s1 = inlined_call_operand.vmem [shape: bf16[64,128], index: 1, kind: input, shape index: {}]   ;;  %s414_s2 = inlined_call_operand.vmem [shape: f32[1,128], index: 2, kind: input, shape index: {}]   ;;  %s415_s3 = inlined_call_operand.vmem [shape: f32[1,128], index: 3, kind: input, shape index: {}]   ;;  %s416_s4 = inlined_call_operand.vmem [shape: f32[1,128], index: 4, kind: input, shape index: {}]   ;;  %s417_s5 = inlined_call_operand.hbm [shape: bf16[32,128], index: 5, kind: output, shape index: {}]  }
   0x1   :  { %v259_v0 = vld [vmem:[%s413_s1 + $0x18] sm:$0xff]  ;;  %v258_v1 = vld [vmem:[%s413_s1 + $0x10] sm:$0xff] }
   0x2   :  { %83 = vmatpush.bf16.msra.mxu0 %v259_v0  ;;  %271 = vmatpush.bf16.msra.mxu1 %v259_v0 }
   0x3   :  { %10 = vsyncpa [#allocation3], 0  ;;  %v257_v2 = vld [vmem:[%s413_s1 + $0x8] sm:$0xff]  ;;  %v256_v3 = vld [vmem:[%s413_s1] sm:$0xff]  ;;  %vm72_vm0 = vcmask 523264   ;;  %s216_s10 = sshll.u32 %s417_s5, 4  ;;  %s217_s10 = int_to_ptr.hbm [resolvable:$true] %s216_s10 }
   0x4   :  { %v254_v4 = vld [vmem:[%s412_s0] sm:$0xff]  ;;  %v255_v5 = vld [vmem:[%s412_s0 + $0x8] sm:$0xff]  ;;  %s316_s11 = smov 64   ;;  %s317_s12 = smov 4  }
   0x5   :  { %v278_v6 = vld [vmem:[%s414_s2] ss:$0 sm:$0xff] }
   0x6   :  { %84 = vmatpush.bf16.msra.mxu0 %v258_v1  ;;  %272 = vmatpush.bf16.msra.mxu1 %v258_v1  ;;  %v279_v0 = vld [vmem:[%s415_s3] ss:$0 sm:$0xff]  ;;  %s315_s3 = smov [#allocation2]  }
   0xa   :  { %85 = vmatpush.bf16.msra.mxu0 %v257_v2  ;;  %273 = vmatpush.bf16.msra.mxu1 %v257_v2 }
   0xe   :  { %86 = vmatpush.bf16.msra.mxu0 %v256_v3  ;;  %274 = vmatpush.bf16.msra.mxu1 %v256_v3 }
  0x11   :  { %252 = vmatmul.msk.bf16.vlgmr.msra.gmra.mxu0 %vm72_vm0, %v254_v4  ;;  %253 = vmatmul.msk.bf16.vlgmr.msra.gmra.mxu1 %vm72_vm0, %v255_v5 }
  0x8e   :  { %v88_v7 = vpop.f32.mrf.mxu0  ;;  %v93_v8 = vpop.f32.mrf.mxu1 }
  0x8f   :  { %v369_v9 = vadd.f32 %v278_v6, %v88_v7  ;;  %v371_v10 = vadd.f32 %v278_v6, %v93_v8 }
  0x91   :  { %102 = vadd.xlane.f32.xlu1 %v371_v10  ;;  %98 = vadd.xlane.f32.xlu0 %v369_v9  ;;  %v106_v11 = vmul.f32 %v369_v9, %v369_v9  ;;  %v108_v18 = vmul.f32 %v371_v10, %v371_v10 }
  0x93   :  { %110 = vadd.xlane.f32.xlu2 %v106_v11 }
  0x96   :  { %v90_v12 = vpop.f32.mrf.mxu0  ;;  %v95_v13 = vpop.f32.mrf.mxu1 }
  0x97   :  { %v377_v14 = vadd.f32 %v278_v6, %v90_v12  ;;  %v379_v15 = vadd.f32 %v278_v6, %v95_v13  ;;  %v280_v13 = vld [vmem:[%s416_s4] ss:$0 sm:$0xff]  ;;  %s214_s4 = sshll.u32 %s315_s3, 4  ;;  %s215_s4 = int_to_ptr.vmem [resolvable:$true] %s214_s4 }
  0x99   :  { %104 = vadd.xlane.f32.xlu1 %v379_v15  ;;  %100 = vadd.xlane.f32.xlu0 %v377_v14  ;;  %v107_v16 = vmul.f32 %v377_v14, %v377_v14  ;;  %v109_v17 = vmul.f32 %v379_v15, %v379_v15 }
  0x9b   :  { %112 = vadd.xlane.f32.xlu2 %v107_v16 }
  0xa1   :  { %116 = vadd.xlane.f32.xlu1 %v109_v17  ;;  %114 = vadd.xlane.f32.xlu0 %v108_v18 }
 0x104   :  { %v103_v19 = vpop.xlane.xlu1 %102  ;;  %v99_v20 = vpop.xlane.xlu0 %98 }
 0x105   :  { %v118_v21 = vmul.f32 0.03125, %v99_v20  ;;  %v389_v32 = vmul.f32 0.03125, %v103_v19 }
 0x106   :  { %v111_v22 = vpop.xlane.xlu2 %110 }
 0x107   :  { %v126_v23 = vmul.f32 %v118_v21, %v118_v21  ;;  %v122_v24 = vmul.f32 0.03125, %v111_v22  ;;  %v128_v37 = vmul.f32 %v389_v32, %v389_v32  ;;  %v134_v60 = vsub.f32 %v369_v9, %v118_v21 }
 0x108   :  { %v136_v20 = vsub.f32 %v371_v10, %v389_v32 }
 0x109   :  { %v130_v25 = vsub.f32 %v122_v24, %v126_v23 }
 0x10b   :  { %v138_v26 = vadd.f32 1e-05, %v130_v25 }
 0x10c   :  { %v105_v27 = vpop.xlane.xlu1 %104  ;;  %v101_v28 = vpop.xlane.xlu0 %100 }
 0x10d   :  { %v119_v29 = vmul.f32 0.03125, %v101_v28  ;;  %281 = vrsqrt.f32 %v138_v26  ;;  %v391_v34 = vmul.f32 0.03125, %v105_v27  ;;  %vm148_vm2 = vweird.f32 %v138_v26 }
 0x10e   :  { %v113_v30 = vpop.xlane.xlu2 %112 }
 0x10f   :  { %v127_v31 = vmul.f32 %v119_v29, %v119_v29  ;;  %v123_v33 = vmul.f32 0.03125, %v113_v30  ;;  %v129_v42 = vmul.f32 %v391_v34, %v391_v34  ;;  %v135_v5 = vsub.f32 %v377_v14, %v119_v29 }
 0x110   :  { %v137_v14 = vsub.f32 %v379_v15, %v391_v34 }
 0x111   :  { %v131_v35 = vsub.f32 %v123_v33, %v127_v31 }
 0x113   :  { %v282_v36 = vpop.eup %281  ;;  %v139_v38 = vadd.f32 1e-05, %v131_v35 }
 0x114   :  { %v117_v39 = vpop.xlane.xlu1 %116  ;;  %v115_v40 = vpop.xlane.xlu0 %114  ;;  %v143_v41 = vmul.f32 %v282_v36, %v138_v26  ;;  %vm149_vm1 = vweird.f32 %v282_v36 }
 0x115   :  { %v125_v43 = vmul.f32 0.03125, %v117_v39  ;;  %v124_v44 = vmul.f32 0.03125, %v115_v40  ;;  %283 = vrsqrt.f32 %v139_v38  ;;  %vm150_vm3 = vmor %vm148_vm2, %vm149_vm1  ;;  %vm158_vm5 = vweird.f32 %v139_v38 }
 0x116   :  { %v144_v45 = vmul.f32 %v282_v36, %v143_v41 }
 0x117   :  { %v133_v46 = vsub.f32 %v125_v43, %v129_v42  ;;  %v132_v47 = vsub.f32 %v124_v44, %v128_v37 }
 0x118   :  { %v145_v48 = vmul.f32 0.5, %v144_v45 }
 0x119   :  { %v141_v49 = vadd.f32 1e-05, %v133_v46  ;;  %v140_v50 = vadd.f32 1e-05, %v132_v47 }
 0x11a   :  { %v146_v51 = vsub.f32 1.5, %v145_v48 }
 0x11b   :  { %285 = vrsqrt.f32 %v141_v49  ;;  %v284_v52 = vpop.eup %283  ;;  %vm178_vm9 = vweird.f32 %v141_v49  ;;  %vm168_vm11 = vweird.f32 %v140_v50 }
 0x11c   :  { %287 = vrsqrt.f32 %v140_v50  ;;  %v147_v53 = vmul.f32 %v282_v36, %v146_v51  ;;  %v153_v54 = vmul.f32 %v284_v52, %v139_v38  ;;  %vm159_vm4 = vweird.f32 %v284_v52 }
 0x11d   :  { %vm160_vm6 = vmor %vm158_vm5, %vm159_vm4 }
 0x11e   :  { %v154_v55 = vmul.f32 %v284_v52, %v153_v54  ;;  %v151_v57 = vsel %vm150_vm3, %v282_v36, %v147_v53 }
 0x11f   :  { %v182_v1 = vmul.f32 %v151_v57, %v134_v60 }
 0x120   :  { %v155_v58 = vmul.f32 0.5, %v154_v55 }
 0x121   :  { %v286_v56 = vpop.eup %285  ;;  %v190_v9 = vmul.f32 %v279_v0, %v182_v1 }
 0x122   :  { %v288_v59 = vpop.eup %287  ;;  %v173_v61 = vmul.f32 %v286_v56, %v141_v49  ;;  %v156_v62 = vsub.f32 1.5, %v155_v58  ;;  %vm179_vm7 = vweird.f32 %v286_v56 }
 0x123   :  { %v163_v63 = vmul.f32 %v288_v59, %v140_v50  ;;  %vm169_vm8 = vweird.f32 %v288_v59  ;;  %vm180_vm10 = vmor %vm178_vm9, %vm179_vm7  ;;  %v198_v22 = vadd.f32 %v280_v13, %v190_v9 }
 0x124   :  { %v174_v2 = vmul.f32 %v286_v56, %v173_v61  ;;  %v157_v3 = vmul.f32 %v284_v52, %v156_v62  ;;  %vm170_vm12 = vmor %vm168_vm11, %vm169_vm8 }
 0x125   :  { %v164_v4 = vmul.f32 %v288_v59, %v163_v63 }
 0x126   :  { %v175_v6 = vmul.f32 0.5, %v174_v2  ;;  %v161_v7 = vsel %vm160_vm6, %v284_v52, %v157_v3 }
 0x127   :  { %v165_v8 = vmul.f32 0.5, %v164_v4  ;;  %v183_v11 = vmul.f32 %v161_v7, %v135_v5 }
 0x128   :  { %v176_v12 = vsub.f32 1.5, %v175_v6 }
 0x129   :  { %v166_v16 = vsub.f32 1.5, %v165_v8  ;;  %v191_v17 = vmul.f32 %v279_v0, %v183_v11 }
 0x12a   :  { %v177_v18 = vmul.f32 %v286_v56, %v176_v12 }
 0x12b   :  { %v167_v19 = vmul.f32 %v288_v59, %v166_v16  ;;  %v199_v23 = vadd.f32 %v280_v13, %v191_v17 }
 0x12c   :  { %v181_v21 = vsel %vm180_vm10, %v286_v56, %v177_v18 }
 0x12d   :  { %v185_v24 = vmul.f32 %v181_v21, %v137_v14  ;;  %v171_v25 = vsel %vm170_vm12, %v288_v59, %v167_v19  ;;  %v263_v27 = vpack.c.bf16 %v199_v23, %v198_v22 }
 0x12e   :  { %v184_v26 = vmul.f32 %v171_v25, %v136_v20 }
 0x12f   :  { %v193_v28 = vmul.f32 %v279_v0, %v185_v24  ;;  %264 = vst [vmem:[#allocation2] sm:$0xff] %v263_v27  }
 0x130   :  { %v192_v29 = vmul.f32 %v279_v0, %v184_v26 }
 0x131   :  { %v201_v15 = vadd.f32 %v280_v13, %v193_v28 }
 0x132   :  { %v200_v30 = vadd.f32 %v280_v13, %v192_v29 }
 0x134   :  { %v268_v10 = vpack.c.bf16 %v201_v15, %v200_v30 }
 0x136   :  { %270 = vst [vmem:[#allocation2 + $0x8] sm:$0xff] %v268_v10  }
 0x137   :  { %222 = dma.vmem_to_hbm [thread:$0]  %s215_s4, 256, %s217_s10, [#allocation3], %s316_s11, %s316_s11, %s317_s12  }
 0x138   :  { %313 = dma.done.wait [#allocation3], 256  }
 0x139   :  { %314 = vsyncadd [#allocation3], 4294967040 }
 0x13a   :  { %227 = vsyncpa [#allocation3], 1 }

</bundles_post_ra>
